<compile_context>
chip_gen: v5e
topology: v5e:2x2
jax: 0.10.0
libtpu: 0.0.40
codegen_flags: <defaults>
</compile_context>

<pallas_src>
import functools

import jax
import jax.numpy as jnp
from jax.experimental import pallas as pl
from jax.experimental.pallas import tpu as pltpu

LN_EPS = 1e-5   # nn.LayerNorm default eps


def _patch_embed_kernel(p_ref, w_ref, pgb_ref, o_ref):
    """Fused patch embedding for one row tile.

    p_ref:   (TM, K)  bf16 im2col patches
    w_ref:   (E, K)   bf16 conv weight in natural flattening (resident)
    pgb_ref: (3, E)   f32 packed [conv bias; LN gamma; LN beta] (resident)
    o_ref:   (TM, E)  output tile (bf16 or f32)
    """
    # MXU "NT" matmul: contract the trailing K of both operands, f32 accumulate.
    y = jax.lax.dot_general(
        p_ref[...], w_ref[...],
        dimension_numbers=(((1,), (1,)), ((), ())),
        preferred_element_type=jnp.float32,
    )
    y = y + pgb_ref[0:1, :]                        # conv bias

    # LayerNorm over embed_dim (two-pass variance for numerical robustness;
    # the extra VPU pass is free -- the kernel is HBM-bound).
    mean = jnp.mean(y, axis=-1, keepdims=True)
    yc = y - mean
    var = jnp.mean(yc * yc, axis=-1, keepdims=True)
    inv = jax.lax.rsqrt(var + LN_EPS)              # EUP

    o_ref[...] = (yc * inv * pgb_ref[1:2, :] + pgb_ref[2:3, :]).astype(o_ref.dtype)


@functools.partial(
    jax.jit,
    static_argnames=("patch_size", "tm", "compute_dtype", "out_dtype"),
)
def patch_embed_pallas(x, conv_w, conv_b, ln_gamma, ln_beta, *,
                       patch_size, tm=512,
                       compute_dtype=jnp.bfloat16, out_dtype=jnp.bfloat16):
    """PatchEmbed.forward for NCHW input x -> (B, num_patches, embed_dim)."""
    B, C, H, W = x.shape
    P = patch_size
    assert H % P == 0 and W % P == 0
    nH, nW = H // P, W // P
    num_patches = nH * nW
    E = conv_w.shape[0]
    K = C * P * P
    M = B * num_patches

    # im2col in the narrow compute dtype (single fused transpose-copy in XLA).
    # TODO(synk): fuse this gather into the kernel to drop the extra HBM pass.
    patches = (
        x.astype(compute_dtype)
        .reshape(B, C, nH, P, nW, P)
        .transpose(0, 2, 4, 1, 3, 5)
        .reshape(M, K)
    )

    # Weight stays (E, K): reshape is metadata-only, cast is one tiny pass;
    # the kernel contracts trailing K dims so no XLA transpose is needed.
    w_mat = conv_w.reshape(E, K).astype(compute_dtype)
    # Pack bias / gamma / beta into a single small resident operand.
    pgb = jnp.stack([conv_b, ln_gamma, ln_beta]).astype(jnp.float32)   # (3, E)

    # Row-tile selection: multiple of 8, and >=2 grid steps whenever possible
    # so ("parallel",) semantics can shard across both v7x TensorCores.
    tm_al = max(8, (int(tm) // 8) * 8)
    if M >= 16:
        tm_eff = min(tm_al, max(8, ((M // 2) // 8) * 8))
    else:
        tm_eff = M
    grid = (pl.cdiv(M, tm_eff),)

    # Explicit VMEM budget (double-buffered tiles + resident operands).
    in_b = jnp.dtype(compute_dtype).itemsize
    out_b = jnp.dtype(out_dtype).itemsize
    vmem_need = (2 * tm_eff * K * in_b          # patches tile (double buffered)
                 + 2 * tm_eff * E * out_b       # output tile  (double buffered)
                 + 2 * E * K * in_b             # resident weight
                 + 2 * 3 * E * 4)               # resident bias/gamma/beta
    vmem_limit = int(min(max(2 * vmem_need, 32 * 2**20), 64 * 2**20))

    out = pl.pallas_call(
        _patch_embed_kernel,
        out_shape=jax.ShapeDtypeStruct((M, E), out_dtype),
        grid=grid,
        in_specs=[
            pl.BlockSpec((tm_eff, K), lambda i: (i, 0)),   # patches row tile
            pl.BlockSpec((E, K), lambda i: (0, 0)),        # weight (resident)
            pl.BlockSpec((3, E), lambda i: (0, 0)),        # bias/gamma/beta
        ],
        out_specs=pl.BlockSpec((tm_eff, E), lambda i: (i, 0)),
        compiler_params=pltpu.CompilerParams(
            dimension_semantics=("parallel",),
            vmem_limit_bytes=vmem_limit,
        ),
    )(patches, w_mat, pgb)

    # Metadata-only reshape back to (B, num_patches, embed_dim).
    return out.reshape(B, num_patches, E)


class GraphEncodingBlockBigParams:
    """Deterministic parameter init mirroring the module's __init__ shapes."""

    def __init__(self, key, img_size, patch_size, num_feature_in, embed_dim,
                 num_heads):
        k_conv, k_rel = jax.random.split(key, 2)
        num_patches = (img_size // patch_size) ** 2
        # Conv2d(num_feature_in, embed_dim, k=patch, s=patch):
        # kaiming_normal fan_out (std = sqrt(2 / fan_out)), bias = 0.
        fan_out = embed_dim * patch_size * patch_size
        std = (2.0 / fan_out) ** 0.5
        self.proj_w = std * jax.random.normal(
            k_conv, (embed_dim, num_feature_in, patch_size, patch_size),
            dtype=jnp.float32)
        self.proj_b = jnp.zeros((embed_dim,), dtype=jnp.float32)
        # LayerNorm(embed_dim): weight = 1, bias = 0 (per _init_weights).
        self.ln_gamma = jnp.ones((embed_dim,), dtype=jnp.float32)
        self.ln_beta = jnp.zeros((embed_dim,), dtype=jnp.float32)
        # relative_pos parameter (num_heads, num_patches, num_patches).
        self.relative_pos = jax.random.normal(
            k_rel, (num_heads, num_patches, num_patches), dtype=jnp.float32)
        self.patch_size = patch_size
        self.num_patches = num_patches


def graph_encoding_block_big_forward(params, x, *, tm=512,
                                     out_dtype=jnp.bfloat16):
    """Forward pass for the fully specified portion of the module."""
    B, C, H, W = x.shape
    P = params.patch_size
    tokens = patch_embed_pallas(
        x, params.proj_w, params.proj_b, params.ln_gamma, params.ln_beta,
        patch_size=P, tm=tm, out_dtype=out_dtype)
    # TODO(synk): CMT_encoder1/2, MHSA, censnet (GCN_big) and the fusion
    #             encoder have no reference definitions; pipeline stops here.
    return tokens, (H // P, W // P), params.relative_pos


def _patch_embed_ref(x, conv_w, conv_b, ln_gamma, ln_beta, patch_size,
                     compute_dtype=None):
    """Pure-JAX reference (PyTorch semantics; optional bf16 input rounding)."""
    B, C, H, W = x.shape
    P = patch_size
    nH, nW = H // P, W // P
    E = conv_w.shape[0]
    patches = (x.reshape(B, C, nH, P, nW, P)
               .transpose(0, 2, 4, 1, 3, 5)
               .reshape(B * nH * nW, C * P * P))
    w = conv_w.reshape(E, -1).T
    if compute_dtype is not None:
        patches = patches.astype(compute_dtype).astype(jnp.float32)
        w = w.astype(compute_dtype).astype(jnp.float32)
    y = patches @ w + conv_b
    mu = y.mean(-1, keepdims=True)
    var = ((y - mu) ** 2).mean(-1, keepdims=True)
    y = (y - mu) / jnp.sqrt(var + LN_EPS)
    y = y * ln_gamma + ln_beta
    return y.reshape(B, nH * nW, E)


if __name__ == "__main__":
    key = jax.random.PRNGKey(0)

    # (B, C, IMG, PATCH, EMBED_DIM, NUM_HEADS, row-tile TM)
    cases = [
        (2, 4, 16, 4, 32, 4, 512),   # tiny: M=32 split into 2 grid steps
        (2, 3, 48, 4, 96, 4, 128),   # M=288: grid=3 with a partial last block
    ]

    for (B, C, IMG, PATCH, E, NH, TM) in cases:
        k_param, k_x, key = jax.random.split(key, 3)

        params = GraphEncodingBlockBigParams(
            k_param, img_size=IMG, patch_size=PATCH, num_feature_in=C,
            embed_dim=E, num_heads=NH)
        x = jax.random.normal(k_x, (B, C, IMG, IMG), dtype=jnp.float32)

        nHW = IMG // PATCH
        ref_tight = _patch_embed_ref(
            x, params.proj_w, params.proj_b, params.ln_gamma, params.ln_beta,
            PATCH, compute_dtype=jnp.bfloat16)
        ref_f32 = _patch_embed_ref(
            x, params.proj_w, params.proj_b, params.ln_gamma, params.ln_beta,
            PATCH, compute_dtype=None)

        for out_dtype in (jnp.float32, jnp.bfloat16):
            tokens, (H, W), rel_pos = graph_encoding_block_big_forward(
                params, x, tm=TM, out_dtype=out_dtype)
            tokens = jax.block_until_ready(tokens)

            assert tokens.shape == (B, nHW * nHW, E)
            assert tokens.dtype == jnp.dtype(out_dtype)
            assert (H, W) == (nHW, nHW)
            assert rel_pos.shape == (NH, nHW * nHW, nHW * nHW)

            tok_f32 = tokens.astype(jnp.float32)

            # Tight check: reference with the same bf16-rounded matmul inputs
            # (isolates kernel correctness from the bf16 input rounding); the
            # bf16-output path gets a correspondingly looser tolerance.
            tol = 2e-3 if out_dtype == jnp.float32 else 2e-2
            assert jnp.allclose(tok_f32, ref_tight, atol=tol, rtol=tol), (
                f"kernel ({out_dtype}) vs bf16-rounded reference mismatch")

            # Loose check: full-f32 PyTorch-equivalent reference (bf16 input /
            # output rounding are the only approximations).
            assert jnp.allclose(tok_f32, ref_f32, atol=1e-1, rtol=1e-1), (
                f"kernel ({out_dtype}) vs f32 reference mismatch")

    print("KERNEL_OK")
</pallas_src>

<mosaic_0001>
module attributes {stable_mosaic.version = 11 : i64} {
  func.func @_patch_embed_kernel(%arg0: i32, %arg1: memref<16x64xbf16, #tpu.memory_space<vmem>>, %arg2: memref<32x64xbf16, #tpu.memory_space<vmem>>, %arg3: memref<3x32xf32, #tpu.memory_space<vmem>>, %arg4: memref<16x32xf32, #tpu.memory_space<vmem>>) attributes {dimension_semantics = [#tpu.dimension_semantics<parallel>], iteration_bounds = array<i64: 2>, scalar_prefetch = 0 : i64, scratch_operands = 0 : i64, tpu.core_type = #tpu.core_type<tc>, window_params = [{transform_indices = @transform_0, window_bounds = array<i64: 16, 64>}, {pipeline_mode = #tpu.pipeline_mode<synchronous>, transform_indices = @transform_1, window_bounds = array<i64: 32, 64>}, {pipeline_mode = #tpu.pipeline_mode<synchronous>, transform_indices = @transform_2, window_bounds = array<i64: 3, 32>}, {transform_indices = @transform_3, window_bounds = array<i64: 16, 32>}]} {
    %c0 = arith.constant 0 : index
    %c0_0 = arith.constant 0 : index
    %0 = vector.load %arg1[%c0, %c0_0] : memref<16x64xbf16, #tpu.memory_space<vmem>>, vector<16x64xbf16>
    %c0_1 = arith.constant 0 : index
    %c0_2 = arith.constant 0 : index
    %1 = vector.load %arg2[%c0_1, %c0_2] : memref<32x64xbf16, #tpu.memory_space<vmem>>, vector<32x64xbf16>
    %cst = arith.constant dense<0.000000e+00> : vector<16x32xf32>
    %2 = tpu.matmul %0, %1, %cst {dimension_numbers = #tpu.dot_dimension_numbers<[1], [1], [0], [0], [0, 0, 1, 0], [], []>} : vector<16x64xbf16>, vector<32x64xbf16>, vector<16x32xf32> -> vector<16x32xf32>
    %c0_3 = arith.constant 0 : index
    %c0_4 = arith.constant 0 : index
    %3 = vector.load %arg3[%c0_3, %c0_4] : memref<3x32xf32, #tpu.memory_space<vmem>>, vector<1x32xf32>
    %4 = vector.broadcast %3 : vector<1x32xf32> to vector<16x32xf32>
    %5 = arith.addf %2, %4 : vector<16x32xf32>
    %cst_5 = arith.constant dense<0.000000e+00> : vector<16xf32>
    %6 = vector.multi_reduction <add>, %5, %cst_5 [1] : vector<16x32xf32> to vector<16xf32>
    %7 = vector.shape_cast %6 : vector<16xf32> to vector<16x1xf32>
    %cst_6 = arith.constant 3.200000e+01 : f32
    %8 = vector.broadcast %cst_6 : f32 to vector<16x1xf32>
    %9 = arith.divf %7, %8 : vector<16x1xf32>
    %10 = vector.broadcast %9 : vector<16x1xf32> to vector<16x32xf32>
    %11 = arith.subf %5, %10 : vector<16x32xf32>
    %12 = arith.mulf %11, %11 : vector<16x32xf32>
    %cst_7 = arith.constant dense<0.000000e+00> : vector<16xf32>
    %13 = vector.multi_reduction <add>, %12, %cst_7 [1] : vector<16x32xf32> to vector<16xf32>
    %14 = vector.shape_cast %13 : vector<16xf32> to vector<16x1xf32>
    %cst_8 = arith.constant 3.200000e+01 : f32
    %15 = vector.broadcast %cst_8 : f32 to vector<16x1xf32>
    %16 = arith.divf %14, %15 : vector<16x1xf32>
    %cst_9 = arith.constant 9.99999974E-6 : f32
    %17 = vector.broadcast %cst_9 : f32 to vector<16x1xf32>
    %18 = arith.addf %16, %17 : vector<16x1xf32>
    %19 = math.rsqrt %18 : vector<16x1xf32>
    %20 = vector.broadcast %19 : vector<16x1xf32> to vector<16x32xf32>
    %21 = arith.mulf %11, %20 : vector<16x32xf32>
    %c1 = arith.constant 1 : index
    %c0_10 = arith.constant 0 : index
    %22 = vector.load %arg3[%c1, %c0_10] : memref<3x32xf32, #tpu.memory_space<vmem>>, vector<1x32xf32>
    %23 = vector.broadcast %22 : vector<1x32xf32> to vector<16x32xf32>
    %24 = arith.mulf %21, %23 : vector<16x32xf32>
    %c2 = arith.constant 2 : index
    %c0_11 = arith.constant 0 : index
    %25 = vector.load %arg3[%c2, %c0_11] : memref<3x32xf32, #tpu.memory_space<vmem>>, vector<1x32xf32>
    %26 = vector.broadcast %25 : vector<1x32xf32> to vector<16x32xf32>
    %27 = arith.addf %24, %26 : vector<16x32xf32>
    %c0_12 = arith.constant 0 : index
    %c0_13 = arith.constant 0 : index
    %28 = vector.load %arg4[%c0_12, %c0_13] : memref<16x32xf32, #tpu.memory_space<vmem>>, vector<16x32xf32>
    tpu.vector_store %arg4[%c0_12, %c0_13], %27 {strides = array<i32>} : memref<16x32xf32, #tpu.memory_space<vmem>>, vector<16x32xf32>,
    return
  }
  func.func @transform_0(%arg0: i32) -> (i32, i32) {
    %c0_i32 = arith.constant 0 : i32
    %c0_i32_0 = arith.constant 0 : i32
    return %arg0, %c0_i32 : i32, i32
  }
  func.func @transform_1(%arg0: i32) -> (i32, i32) {
    %c0_i32 = arith.constant 0 : i32
    %c0_i32_0 = arith.constant 0 : i32
    %c0_i32_1 = arith.constant 0 : i32
    return %c0_i32, %c0_i32_0 : i32, i32
  }
  func.func @transform_2(%arg0: i32) -> (i32, i32) {
    %c0_i32 = arith.constant 0 : i32
    %c0_i32_0 = arith.constant 0 : i32
    %c0_i32_1 = arith.constant 0 : i32
    return %c0_i32, %c0_i32_0 : i32, i32
  }
  func.func @transform_3(%arg0: i32) -> (i32, i32) {
    %c0_i32 = arith.constant 0 : i32
    %c0_i32_0 = arith.constant 0 : i32
    return %arg0, %c0_i32 : i32, i32
  }
}

</mosaic_0001>

<bundles_post_ra>
// kernel: patch_embed_pallas.1
= control target key start
LH: loop header
LB: loop body
LE: loop exit
PB: predicated region body
PF: predicated region fallthrough
CT: control target
= control target key end

     0   :  { %8 = vsyncpa [#allocation3], 0  ;;  %s632_s0 = inlined_call_operand.vmem [shape: bf16[32,64], index: 0, kind: input, shape index: {}]   ;;  %s633_s1 = inlined_call_operand.vmem [shape: bf16[32,64], index: 1, kind: input, shape index: {}]   ;;  %s634_s2 = inlined_call_operand.vmem [shape: f32[3,32], index: 2, kind: input, shape index: {}]   ;;  %s635_s3 = inlined_call_operand.hbm [shape: f32[32,32], index: 3, kind: output, shape index: {}]  }
   0x1   :  { %10 = vsyncpa [#allocation3 + $0x1], 0  ;;  %s527_s12 = smov 0   ;;  %s529_s13 = smov 0  }
   0x2   :  { %s531_s14 = smov 0   ;;  %s533_s15 = smov 0  }
   0x3 LB: > { %s548_s16 = sadd.s32 4294967295, %s502_s15   ;;  %s360_s17 = sadd.s32 4294967294, %s502_s15   ;;  %s502_s15 = sphi %s533_s15, %s641_s15   ;;  %s498_s14 = sphi %s531_s14, %s640_s14   ;;  %s494_s13 = sphi %s529_s13, %s639_s13   ;;  %s490_s12 = sphi %s527_s12, %s638_s12  }
   0x4   : > { %s552_s18 = sadd.s32 1, %s502_s15   ;;  %s91_s19 = sadd.s32 1, %s498_s14 }
   0x5   : > { %s88_s20 = ssub.s32 %s502_s15, %s552_s18  ;;  %p101_p0 = scmp.ne.s32.totalorder %s498_s14, %s494_s13 }
   0x6   : > { %p89_p1 = scmp.eq.s32.totalorder %s88_s20, 0  ;;  %p102_p2 = scmp.eq.s32.totalorder %s548_s16, 1 }
   0x7   : > { %p107_p3 = scmp.ne.s32.totalorder %s494_s13, %s490_s12  ;;  %p108_p4 = scmp.eq.s32.totalorder %s360_s17, 1 }
   0x8   : > { %s563_s21 = scalar_select %p89_p1, %s498_s14, %s91_s19  }
   0x9   : > { %p565_p5 = por %p102_p2, %p101_p0  ;;  %p569_p6 = por %p108_p4, %p107_p3 }
   0xa   : > { %p363_p7 = scmp.ge.s32.totalorder %s502_s15, 1  ;;  %p141_p8 = scmp.lt.s32.totalorder %s502_s15, 3 }
   0xc   : > { %p142_p9 = pnand %p363_p7, %p141_p8 }
   0xd   : > { %s365_s26 = sshll.u32 (!%p142_p9), %s548_s16, 1  ;;  %s162_s8 = sand.u32 (!%p142_p9), 1, %s494_s13  }
   0xe   : > { %145 = sbr.rel (%p142_p9) target bundleno = 444 (0x1bc), region = 32  ;;  %p166_p10 = scmp.lt.s32.totalorder (!%p142_p9), %s365_s26, 3 }
   0xf   : > { %s364_s19 = sshll.u32 (!%p142_p9), %s162_s8, 4  ;;  %s388_s20 = sshll.u32 (!%p142_p9), %s548_s16, 4 }
  0x10   : > { %s164_s27 = scalar_lea.vmem (!%p142_p9), [#allocation2], %s364_s19  ;;  %s283_s16 = scalar_lea.sflag (!%p142_p9), [#allocation3], %s162_s8 }
  0x11   : > { %s295_s28 = sshll.u32 (!%p142_p9), %s164_s27, 4  ;;  %s460_s7 = scalar_lea.hbm (!%p142_p9), %s635_s3, 32  ;;  %s296_s28 = int_to_ptr.vmem [resolvable:$true] %s295_s28 }
  0x13   : > { %v387_v0 = vld [vmem:[%s633_s1 + $0x8] sm:$0xff]  ;;  %vm196_vm0 = vcmask 523264   ;;  %v386_v2 = vld [vmem:[%s633_s1] sm:$0xff]  ;;  %s643_s26 = smov (!%p166_p10, %s365_s26), 3  ;;  %vm220_vm1 = vcmask 261120   ;;  %v504_v12 = vmov 32.0  }
  0x14   : > { %v204_v1 = vsel %vm196_vm0, %v387_v0, 0  ;;  %v201_v3 = vsel %vm196_vm0, %v386_v2, 0  ;;  %s366_s29 = sshll.u32 %s643_s26, 2  ;;  %v431_v5 = vld [vmem:[%s634_s2] ss:$0 sm:$0xff]  ;;  %434 = vrcp.f32 %v504_v12  ;;  %s294_s26 = scalar_lea.hbm %s635_s3, %s388_s20 }
  0x15   : > { %212 = vmatpush.bf16.xpose.msra.mxu0 %v204_v1  ;;  %s169_s5 = scalar_lea.vmem %s632_s0, %s366_s29  ;;  %v432_v43 = vld [vmem:[%s634_s2 + $0x1] ss:$0 sm:$0xff]  ;;  %v433_v46 = vld [vmem:[%s634_s2 + $0x2] ss:$0 sm:$0xff]  ;;  %s297_s29 = sshll.u32 %s294_s26, 4  ;;  %s298_s29 = int_to_ptr.hbm [resolvable:$true] %s297_s29 }
  0x16   : > { %v385_v4 = vld [vmem:[%s169_s5] sm:$0xff]  ;;  %s454_s30 = sshra.s32 %s298_s29, 4  ;;  %s455_s30 = int_to_ptr.hbm [resolvable:$true] %s454_s30 }
  0x17   : > { %s456_s4 = scalar_lea.hbm %s455_s30, 16  ;;  %p461_p0 = scmp.lt.s32.totalorder %s455_s30, %s635_s3 }
  0x18   : > { %p457_p11 = scmp.ne.s32.totalorder %s455_s30, %s456_s4  ;;  %p462_p1 = scmp.lt.s32.totalorder %s460_s7, %s456_s4 }
  0x1a   : > { %v435_v13 = vpop.eup %434  ;;  %p458_p12 = pnand %p457_p11, %p565_p5  ;;  %p463_p2 = por %p462_p1, %p461_p0 }
  0x1b   : > { %v228_v14 = vmul.f32 32.0, %v435_v13  ;;  %vm232_vm2 = vweird.f32 %v435_v13 }
  0x1c   : > { %p459_p13 = pneg %p458_p12 }
  0x1d   : > { %213 = vmatpush.bf16.xpose.msra.mxu0 %v201_v3  ;;  %v229_v15 = vsub.f32 1.0, %v228_v14 }
  0x1e   : > { %p464_p3 = pnand %p463_p2, %p459_p13 }
  0x1f   : > { %v230_v16 = vmul.f32 %v435_v13, %v229_v15 }
  0x21   : > { %v231_v17 = vadd.f32 %v435_v13, %v230_v16 }
  0x23   : > { %v233_v18 = vsel %vm232_vm2, %v435_v13, %v231_v17 }
  0x24   : > { %379 = vmatmul.msk.bf16.vlgmr.msra.gmra.mxu0 %vm196_vm0, %v385_v4 }
  0xa1   : > { %v215_v6 = vpop.f32.mrf.mxu0 }
  0xa2   : > { %v216_v7 = vadd.f32 %v431_v5, %v215_v6 }
  0xa4   : > { %v221_v8 = vsel %vm220_vm1, %v216_v7, 0.0 }
  0xa5   : > { %222 = vadd.xlane.f32.xlu0 %v221_v8 }
  0xa9   : > { %v217_v9 = vpop.f32.mrf.mxu0 }
  0xaa   : > { %v218_v10 = vadd.f32 %v431_v5, %v217_v9 }
  0xac   : > { %v224_v11 = vsel %vm220_vm1, %v218_v10, 0.0 }
  0xad   : > { %225 = vadd.xlane.f32.xlu0 %v224_v11 }
 0x118   : > { %v223_v19 = vpop.xlane.xlu0 %222 }
 0x119   : > { %v234_v20 = vmul.f32 %v233_v18, %v223_v19 }
 0x11b   : > { %v236_v21 = vsub.f32 %v216_v7, %v234_v20 }
 0x11d   : > { %v238_v22 = vmul.f32 %v236_v21, %v236_v21 }
 0x11f   : > { %v240_v23 = vsel %vm220_vm1, %v238_v22, 0.0 }
 0x120   : > { %241 = vadd.xlane.f32.xlu1 %v240_v23  ;;  %v226_v24 = vpop.xlane.xlu0 %225 }
 0x121   : > { %v235_v25 = vmul.f32 %v233_v18, %v226_v24 }
 0x123   : > { %v237_v26 = vsub.f32 %v218_v10, %v235_v25 }
 0x125   : > { %v239_v27 = vmul.f32 %v237_v26, %v237_v26 }
 0x127   : > { %v243_v28 = vsel %vm220_vm1, %v239_v27, 0.0 }
 0x128   : > { %244 = vadd.xlane.f32.xlu1 %v243_v28 }
 0x193   : > { %v242_v29 = vpop.xlane.xlu1 %241 }
 0x194   : > { %v246_v30 = vmul.f32 %v242_v29, %v233_v18 }
 0x196   : > { %v248_v31 = vadd.f32 1e-05, %v246_v30 }
 0x198   : > { %436 = vrsqrt.f32 %v248_v31  ;;  %vm256_vm4 = vweird.f32 %v248_v31 }
 0x19b   : > { %v245_v32 = vpop.xlane.xlu1 %244 }
 0x19c   : > { %v247_v33 = vmul.f32 %v245_v32, %v233_v18 }
 0x19e   : > { %v437_v34 = vpop.eup %436  ;;  %v249_v35 = vadd.f32 1e-05, %v247_v33 }
 0x19f   : > { %v251_v36 = vmul.f32 %v437_v34, %v248_v31  ;;  %vm257_vm3 = vweird.f32 %v437_v34 }
 0x1a0   : > { %438 = vrsqrt.f32 %v249_v35  ;;  %vm258_vm5 = vmor %vm256_vm4, %vm257_vm3  ;;  %vm266_vm7 = vweird.f32 %v249_v35 }
 0x1a1   : > { %v252_v37 = vmul.f32 %v437_v34, %v251_v36 }
 0x1a3   : > { %v253_v38 = vmul.f32 0.5, %v252_v37 }
 0x1a5   : > { %v254_v39 = vsub.f32 1.5, %v253_v38 }
 0x1a6   : > { %v439_v40 = vpop.eup %438 }
 0x1a7   : > { %v255_v41 = vmul.f32 %v437_v34, %v254_v39  ;;  %v261_v42 = vmul.f32 %v439_v40, %v249_v35  ;;  %vm267_vm6 = vweird.f32 %v439_v40 }
 0x1a8   : > { %vm268_vm8 = vmor %vm266_vm7, %vm267_vm6 }
 0x1a9   : > { %v259_v44 = vsel %vm258_vm5, %v437_v34, %v255_v41  ;;  %v262_v45 = vmul.f32 %v439_v40, %v261_v42 }
 0x1aa   : > { %v270_v47 = vmul.f32 %v259_v44, %v236_v21 }
 0x1ab   : > { %v263_v48 = vmul.f32 0.5, %v262_v45 }
 0x1ac   : > { %v274_v49 = vmul.f32 %v432_v43, %v270_v47 }
 0x1ad   : > { %v264_v50 = vsub.f32 1.5, %v263_v48 }
 0x1ae   : > { %v278_v51 = vadd.f32 %v433_v46, %v274_v49 }
 0x1af   : > { %v265_v52 = vmul.f32 %v439_v40, %v264_v50 }
 0x1b0   : > { %280 = vst.msk [vmem:[%s164_s27] sm:$0xff] %vm220_vm1, %v278_v51 }
 0x1b1   : > { %v269_v53 = vsel %vm268_vm8, %v439_v40, %v265_v52 }
 0x1b2   : > { %v271_v54 = vmul.f32 %v269_v53, %v237_v26 }
 0x1b4   : > { %v275_v55 = vmul.f32 %v432_v43, %v271_v54 }
 0x1b6   : > { %v279_v56 = vadd.f32 %v433_v46, %v275_v55 }
 0x1b8   : > { %281 = vst.msk [vmem:[%s164_s27 + $0x8] sm:$0xff] %vm220_vm1, %v279_v56 }
 0x1b9   : > { %467 = shalt.err (!%p464_p3)
}
 0x1ba   : > { %s505_s8 = smov 128   ;;  %s506_s11 = smov 8  }
 0x1bb   : > { %389 = dma.vmem_to_hbm [thread:$0]  (%p565_p5), %s296_s28, 256, %s298_s29, %s283_s16, %s505_s8, %s505_s8, %s506_s11  }
 0x1bc PF: > { %p395_p4 = scmp.ge.s32.totalorder %s502_s15, 2  ;;  %s312_s17 = sand.u32 1, %s490_s12  }
 0x1bd   : > { %s313_s19 = scalar_lea.sflag [#allocation3], %s312_s17 }
 0x1be   : > { %p392_p7 = pnand %p395_p4, %p569_p6 }
 0x1c0   : > { %p393_p8 = pneg %p392_p7 }
 0x1c2   : > { %485 = dma.done.wait (%p393_p8), %s313_s19, 256  }
 0x1c3   : > { %487 = vsyncadd (%p393_p8), %s313_s19, 4294967040  ;;  %p13_p9 = scmp.ge.s32.totalorder %s552_s18, 4   ;;  %s638_s12 = smov %s494_s13 }
 0x1c4   : > { %s639_s13 = smov %s498_s14  ;;  %s640_s14 = smov %s563_s21 }
 0x1c5   : > { %s641_s15 = smov %s552_s18  ;;  %15 = sbr.rel (!%p13_p9) target bundleno = 3 (0x3), region = 67 }
 0x1ca   :  { %319 = vsyncpa [#allocation3], 1 }
 0x1cb   :  { %321 = vsyncpa [#allocation3 + $0x1], 1 }

</bundles_post_ra>
